<compile_context>
chip_gen: v7x
topology: tpu7x:2x2x1
jax: 0.10.0
libtpu: 0.0.40
codegen_flags: <defaults>
</compile_context>

<pallas_src>
import jax
import jax.numpy as jnp
from jax.experimental import pallas as pl
from jax.experimental.pallas import tpu as pltpu


# ----------------------------- kernels ------------------------------------


def _adapter5_kernel_proj(x_ref, w1_ref, b1_ref, w2_ref, b2_ref, wsc_ref,
                          o_ref):
    """Fused forward, projection (channel zero-pad) shortcut.

    x_ref:  (BN, Cin, TP)  pixels on the lane axis, native dtype
    w1_ref: (Chid, Cin)    conv1 weight with BN1 scale folded in (x dtype)
    b1_ref: (Chid, 1)      BN1 shift (f32)
    w2_ref: (Cout, Chid)   conv2 weight with BN2 scale folded in (x dtype)
    b2_ref: (Cout, 1)      BN2 shift (f32)
    wsc_ref:(Cout, Cin)    identity rows at the channel-pad offset (x dtype)
    o_ref:  (BN, Cout, TP)
    """
    bn = x_ref.shape[0]
    for i in range(bn):                      # static unroll, bn <= 8
        x = x_ref[i]                         # (Cin, TP), native dtype
        h = jnp.dot(w1_ref[...], x, preferred_element_type=jnp.float32)
        h = jnp.maximum(h + b1_ref[...], 0.0)
        h = h.astype(x.dtype)                # fast MXU path for the 2nd dot
        out = jnp.dot(w2_ref[...], h, preferred_element_type=jnp.float32)
        out = out + b2_ref[...]
        # channel-padded shortcut via tiny identity projection (no HBM tensor)
        out = out + jnp.dot(wsc_ref[...], x, preferred_element_type=jnp.float32)
        o_ref[i] = jnp.maximum(out, 0.0).astype(o_ref.dtype)


def _adapter5_kernel_identity(x_ref, w1_ref, b1_ref, w2_ref, b2_ref, o_ref):
    """Fused forward, identity shortcut (c_in == c_out): reuse the x tile."""
    bn = x_ref.shape[0]
    for i in range(bn):
        x = x_ref[i]
        h = jnp.dot(w1_ref[...], x, preferred_element_type=jnp.float32)
        h = jnp.maximum(h + b1_ref[...], 0.0)
        h = h.astype(x.dtype)
        out = jnp.dot(w2_ref[...], h, preferred_element_type=jnp.float32)
        out = out + b2_ref[...]
        out = out + x.astype(jnp.float32)
        o_ref[i] = jnp.maximum(out, 0.0).astype(o_ref.dtype)


# ----------------------------- tiling -------------------------------------


def _largest_divisor_leq(n, cap):
    cap = max(1, min(n, cap))
    for d in range(cap, 0, -1):
        if n % d == 0:
            return d
    return 1


def _choose_tiling(n, p, c_in, c_hid, c_out, dtype_bytes):
    """Pick (bn, tp): images per block and pixel-tile width (lanes)."""
    TARGET_IO_BYTES = 4 << 20      # ~4 MiB of x+out HBM traffic per block
    MAX_TP = 32768                 # lane-tile cap
    MAX_BN = 8                     # static-unroll cap for the per-image loop
    VMEM_BUDGET = 24 << 20         # headroom under the 32 MiB scoped limit

    per_pixel_io = (c_in + c_out) * dtype_bytes
    tp_target = TARGET_IO_BYTES // per_pixel_io
    tp_target = max(128, min(MAX_TP, (tp_target // 128) * 128))

    if p > tp_target:
        tp, bn = tp_target, 1              # tile the pixel axis (tail masked)
    else:
        tp = p                             # full pixel axis (always legal)
        bn_cap = max(1, min(n, MAX_BN, tp_target // max(p, 1)))
        bn = _largest_divisor_leq(n, bn_cap)

    # Megacore: keep >= 2 grid blocks on a parallel axis when there is work.
    if (n // bn) * pl.cdiv(p, tp) == 1:
        if n >= 2:
            bn = _largest_divisor_leq(n, max(1, n // 2))
        elif p >= 512:
            tp = ((p + 1) // 2 + 127) // 128 * 128

    # VMEM budget: double-buffered x/out blocks + f32 in-kernel temporaries.
    def est(bn_, tp_):
        io = 2 * bn_ * (c_in + c_out) * tp_ * dtype_bytes
        tmp = bn_ * (c_hid + 2 * c_out) * tp_ * 4
        return io + tmp

    while est(bn, tp) > VMEM_BUDGET and (bn > 1 or tp > 128):
        if bn > 1:
            bn = _largest_divisor_leq(n, max(1, bn // 2))
        else:
            tp = max(128, ((tp // 2 + 127) // 128) * 128)

    return bn, tp


# ----------------------------- wrapper -------------------------------------


def adapter5_forward(x_nchw, params, *, stride=1):
    """Adapter5 forward on an NCHW input using the fused Pallas kernel.

    params: dict with
      w1 (Chid, Cin), w2 (Cout, Chid)   -- 1x1 conv weights (spatial squeezed)
      bn1_gamma/beta/mean/var (Chid,), bn2_* (Cout,)
    """
    w1 = params["w1"]          # (Chid, Cin)
    w2 = params["w2"]          # (Cout, Chid)
    c_hid, c_in = w1.shape
    c_out = w2.shape[0]
    eps = 1e-5

    # The PyTorch module hard-codes ::2 for the strided shortcut, and the
    # F.pad shortcut only supports expanding channels.
    assert stride in (1, 2), "Adapter5 shortcut only supports stride 1 or 2"
    assert c_out >= c_in, "Adapter5 shortcut only supports c_out >= c_in"

    n, c, h, w = x_nchw.shape
    assert c == c_in

    # ---- glue: stride sub-sampling (1x1 conv with stride == subsample) ----
    # TODO(synk): fuse the ::2 subsample into the kernel DMA (strided
    # BlockSpec over an (N, C, H//2, 2, W//2, 2) view) to skip this HBM
    # round-trip; kept wrapper-side for now because the fused tile would be
    # lane-sparse (W//2 lanes) at the small stride-2 feature maps this
    # adapter targets.
    x_s = x_nchw if stride == 1 else x_nchw[:, :, ::stride, ::stride]
    hs, ws = x_s.shape[2], x_s.shape[3]
    p = hs * ws
    x_flat = x_s.reshape(n, c_in, p)      # NCHW is channel-major: no transpose

    compute_dtype = x_nchw.dtype
    dtype_bytes = jnp.dtype(compute_dtype).itemsize

    # ---- fold BN (inference mode) into conv weights + per-channel bias ----
    # Weights are cast to the activation dtype (bf16 in production) so the
    # MXU uses its native fast path; biases stay f32 and are added to the
    # f32 accumulator inside the kernel.
    s1 = params["bn1_gamma"] / jnp.sqrt(params["bn1_var"] + eps)
    b1 = params["bn1_beta"] - params["bn1_mean"] * s1
    s2 = params["bn2_gamma"] / jnp.sqrt(params["bn2_var"] + eps)
    b2 = params["bn2_beta"] - params["bn2_mean"] * s2

    w1_eff = (w1.astype(jnp.float32) * s1[:, None]).astype(compute_dtype)
    w2_eff = (w2.astype(jnp.float32) * s2[:, None]).astype(compute_dtype)
    b1_col = b1.reshape(c_hid, 1).astype(jnp.float32)
    b2_col = b2.reshape(c_out, 1).astype(jnp.float32)

    # ---- channel-scaled, VMEM-budgeted tiling -----------------------------
    bn_blk, tp = _choose_tiling(n, p, c_in, c_hid, c_out, dtype_bytes)
    grid = (n // bn_blk, pl.cdiv(p, tp))

    def pix_map(bi, pi):
        return (bi, 0, pi)

    def bc_map(bi, pi):
        return (0, 0)

    x_spec = pl.BlockSpec((bn_blk, c_in, tp), pix_map)
    o_spec = pl.BlockSpec((bn_blk, c_out, tp), pix_map)
    w1_spec = pl.BlockSpec((c_hid, c_in), bc_map)
    b1_spec = pl.BlockSpec((c_hid, 1), bc_map)
    w2_spec = pl.BlockSpec((c_out, c_hid), bc_map)
    b2_spec = pl.BlockSpec((c_out, 1), bc_map)

    identity_shortcut = (c_in == c_out)
    if identity_shortcut:
        kernel = _adapter5_kernel_identity
        in_specs = [x_spec, w1_spec, b1_spec, w2_spec, b2_spec]
        args = (x_flat, w1_eff, b1_col, w2_eff, b2_col)
        sc_flops = 0
        sc_bytes = 0
    else:
        pad_front = (c_out - c_in) // 2
        pad_back = c_out - c_in - pad_front
        w_sc = jnp.pad(jnp.eye(c_in, dtype=jnp.float32),
                       ((pad_front, pad_back), (0, 0))).astype(compute_dtype)
        kernel = _adapter5_kernel_proj
        in_specs = [x_spec, w1_spec, b1_spec, w2_spec, b2_spec,
                    pl.BlockSpec((c_out, c_in), bc_map)]
        args = (x_flat, w1_eff, b1_col, w2_eff, b2_col, w_sc)
        sc_flops = 2 * n * p * c_out * c_in
        sc_bytes = c_out * c_in * dtype_bytes

    flops = 2 * n * p * (c_hid * c_in + c_out * c_hid) + sc_flops
    bytes_accessed = (n * p * (c_in + c_out) * dtype_bytes
                      + (c_hid * c_in + c_out * c_hid) * dtype_bytes
                      + (c_hid + c_out) * 4 + sc_bytes)
    cost = pl.CostEstimate(flops=flops, transcendentals=0,
                           bytes_accessed=bytes_accessed)

    out_flat = pl.pallas_call(
        kernel,
        out_shape=jax.ShapeDtypeStruct((n, c_out, p), compute_dtype),
        grid_spec=pltpu.PrefetchScalarGridSpec(
            num_scalar_prefetch=0,
            grid=grid,
            in_specs=in_specs,
            out_specs=o_spec,
        ),
        compiler_params=pltpu.CompilerParams(
            dimension_semantics=("parallel", "parallel"),
            vmem_limit_bytes=32 * 1024 * 1024),
        cost_estimate=cost,
    )(*args)

    return out_flat.reshape(n, c_out, hs, ws)


# ----------------------------- reference -----------------------------------


def _reference_forward(x_nchw, params, *, stride=1):
    """Pure-JAX reference mirroring the PyTorch forward (BN in eval mode)."""
    eps = 1e-5
    w1, w2 = params["w1"], params["w2"]
    c_in = w1.shape[1]
    c_out = w2.shape[0]

    x_s = x_nchw[:, :, ::stride, ::stride]
    h = jnp.einsum("nchw,oc->nohw", x_s, w1)
    h = (h - params["bn1_mean"][None, :, None, None]) / jnp.sqrt(
        params["bn1_var"][None, :, None, None] + eps)
    h = h * params["bn1_gamma"][None, :, None, None] + \
        params["bn1_beta"][None, :, None, None]
    h = jnp.maximum(h, 0.0)

    o = jnp.einsum("nchw,oc->nohw", h, w2)
    o = (o - params["bn2_mean"][None, :, None, None]) / jnp.sqrt(
        params["bn2_var"][None, :, None, None] + eps)
    o = o * params["bn2_gamma"][None, :, None, None] + \
        params["bn2_beta"][None, :, None, None]

    if stride == 1 and c_in == c_out:
        sc = x_s
    else:
        pad_front = (c_out - c_in) // 2
        pad_back = c_out - c_in - pad_front
        sc = jnp.pad(x_s, ((0, 0), (pad_front, pad_back), (0, 0), (0, 0)))
    return jnp.maximum(o + sc, 0.0)


def _make_params(key, c_in, c_hid, c_out):
    k = jax.random.split(key, 11)
    return {
        "w1": jax.random.normal(k[0], (c_hid, c_in), jnp.float32) * 0.2,
        "w2": jax.random.normal(k[1], (c_out, c_hid), jnp.float32) * 0.2,
        "bn1_gamma": 1.0 + 0.1 * jax.random.normal(k[2], (c_hid,), jnp.float32),
        "bn1_beta": 0.1 * jax.random.normal(k[3], (c_hid,), jnp.float32),
        "bn1_mean": 0.05 * jax.random.normal(k[4], (c_hid,), jnp.float32),
        "bn1_var": 1.0 + 0.1 * jax.random.uniform(k[5], (c_hid,), jnp.float32),
        "bn2_gamma": 1.0 + 0.1 * jax.random.normal(k[6], (c_out,), jnp.float32),
        "bn2_beta": 0.1 * jax.random.normal(k[7], (c_out,), jnp.float32),
        "bn2_mean": 0.05 * jax.random.normal(k[8], (c_out,), jnp.float32),
        "bn2_var": 1.0 + 0.1 * jax.random.uniform(k[9], (c_out,), jnp.float32),
    }


if __name__ == "__main__":
    key = jax.random.PRNGKey(0)
    k_x1, k_p1, k_x2, k_p2, k_x3, k_p3 = jax.random.split(key, 6)

    # --- test 1: channel-expanding (projection) shortcut, stride 1, f32 ---
    N, C_IN, H, W = 2, 4, 16, 16
    C_HID, C_OUT = 8, 8
    x1 = jax.random.normal(k_x1, (N, C_IN, H, W), dtype=jnp.float32)
    p1 = _make_params(k_p1, C_IN, C_HID, C_OUT)
    out1 = jax.block_until_ready(adapter5_forward(x1, p1, stride=1))
    ref1 = _reference_forward(x1, p1, stride=1)
    assert out1.shape == (N, C_OUT, H, W), out1.shape
    assert jnp.allclose(out1, ref1, atol=2e-4, rtol=2e-4), \
        float(jnp.max(jnp.abs(out1 - ref1)))

    # --- test 2: identity-channel shortcut, stride 2 (p=64 < 128), f32 ----
    C_IN2, C_HID2, C_OUT2, STRIDE2 = 8, 16, 8, 2
    x2 = jax.random.normal(k_x2, (N, C_IN2, H, W), dtype=jnp.float32)
    p2 = _make_params(k_p2, C_IN2, C_HID2, C_OUT2)
    out2 = jax.block_until_ready(adapter5_forward(x2, p2, stride=STRIDE2))
    ref2 = _reference_forward(x2, p2, stride=STRIDE2)
    assert out2.shape == (N, C_OUT2, H // STRIDE2, W // STRIDE2), out2.shape
    assert jnp.allclose(out2, ref2, atol=2e-4, rtol=2e-4), \
        float(jnp.max(jnp.abs(out2 - ref2)))

    # --- test 3: pixel-tiled path with ragged masked tail (n=1, p=1600) ----
    C_IN3, C_HID3, C_OUT3 = 16, 16, 32
    x3 = jax.random.normal(k_x3, (1, C_IN3, 40, 40), dtype=jnp.float32)
    p3 = _make_params(k_p3, C_IN3, C_HID3, C_OUT3)
    out3 = jax.block_until_ready(adapter5_forward(x3, p3, stride=1))
    ref3 = _reference_forward(x3, p3, stride=1)
    assert out3.shape == (1, C_OUT3, 40, 40), out3.shape
    assert jnp.allclose(out3, ref3, atol=2e-4, rtol=2e-4), \
        float(jnp.max(jnp.abs(out3 - ref3)))

    # --- test 4: native bf16 I/O path (production dtype), loose tolerance --
    x4 = x1.astype(jnp.bfloat16)
    out4 = jax.block_until_ready(adapter5_forward(x4, p1, stride=1))
    ref4 = _reference_forward(x4.astype(jnp.float32), p1, stride=1)
    assert out4.dtype == jnp.bfloat16, out4.dtype
    assert jnp.allclose(out4.astype(jnp.float32), ref4, atol=5e-2, rtol=5e-2), \
        float(jnp.max(jnp.abs(out4.astype(jnp.float32) - ref4)))

    print("KERNEL_OK")
</pallas_src>

<mosaic_0001>
module attributes {stable_mosaic.version = 11 : i64} {
  func.func @_adapter5_kernel_proj(%arg0: i32, %arg1: i32, %arg2: memref<1x4x256xf32, #tpu.memory_space<vmem>>, %arg3: memref<8x4xf32, #tpu.memory_space<vmem>>, %arg4: memref<8x1xf32, #tpu.memory_space<vmem>>, %arg5: memref<8x8xf32, #tpu.memory_space<vmem>>, %arg6: memref<8x1xf32, #tpu.memory_space<vmem>>, %arg7: memref<8x4xf32, #tpu.memory_space<vmem>>, %arg8: memref<1x8x256xf32, #tpu.memory_space<vmem>>) attributes {dimension_semantics = [#tpu.dimension_semantics<parallel>, #tpu.dimension_semantics<parallel>], iteration_bounds = array<i64: 2, 1>, scalar_prefetch = 0 : i64, scratch_operands = 0 : i64, tpu.core_type = #tpu.core_type<tc>, window_params = [{transform_indices = @transform_0, window_bounds = array<i64: 1, 4, 256>}, {pipeline_mode = #tpu.pipeline_mode<synchronous>, transform_indices = @transform_1, window_bounds = array<i64: 8, 4>}, {pipeline_mode = #tpu.pipeline_mode<synchronous>, transform_indices = @transform_2, window_bounds = array<i64: 8, 1>}, {pipeline_mode = #tpu.pipeline_mode<synchronous>, transform_indices = @transform_3, window_bounds = array<i64: 8, 8>}, {pipeline_mode = #tpu.pipeline_mode<synchronous>, transform_indices = @transform_4, window_bounds = array<i64: 8, 1>}, {pipeline_mode = #tpu.pipeline_mode<synchronous>, transform_indices = @transform_5, window_bounds = array<i64: 8, 4>}, {transform_indices = @transform_6, window_bounds = array<i64: 1, 8, 256>}]} {
    %c0 = arith.constant 0 : index
    %c0_0 = arith.constant 0 : index
    %c0_1 = arith.constant 0 : index
    %0 = vector.load %arg2[%c0, %c0_0, %c0_1] : memref<1x4x256xf32, #tpu.memory_space<vmem>>, vector<1x4x256xf32>
    %1 = vector.shape_cast %0 : vector<1x4x256xf32> to vector<4x256xf32>
    %c0_2 = arith.constant 0 : index
    %c0_3 = arith.constant 0 : index
    %2 = vector.load %arg3[%c0_2, %c0_3] : memref<8x4xf32, #tpu.memory_space<vmem>>, vector<8x4xf32>
    %cst = arith.constant dense<0.000000e+00> : vector<8x256xf32>
    %3 = tpu.matmul %2, %1, %cst {dimension_numbers = #tpu.dot_dimension_numbers<[1], [0], [0], [1], [0, 0, 1, 1], [], []>} : vector<8x4xf32>, vector<4x256xf32>, vector<8x256xf32> -> vector<8x256xf32>
    %c0_4 = arith.constant 0 : index
    %c0_5 = arith.constant 0 : index
    %4 = vector.load %arg4[%c0_4, %c0_5] : memref<8x1xf32, #tpu.memory_space<vmem>>, vector<8x1xf32>
    %5 = vector.broadcast %4 : vector<8x1xf32> to vector<8x256xf32>
    %6 = arith.addf %3, %5 : vector<8x256xf32>
    %cst_6 = arith.constant 0.000000e+00 : f32
    %7 = vector.broadcast %cst_6 : f32 to vector<8x256xf32>
    %8 = arith.maximumf %6, %7 : vector<8x256xf32>
    %c0_7 = arith.constant 0 : index
    %c0_8 = arith.constant 0 : index
    %9 = vector.load %arg5[%c0_7, %c0_8] : memref<8x8xf32, #tpu.memory_space<vmem>>, vector<8x8xf32>
    %cst_9 = arith.constant dense<0.000000e+00> : vector<8x256xf32>
    %10 = tpu.matmul %9, %8, %cst_9 {dimension_numbers = #tpu.dot_dimension_numbers<[1], [0], [0], [1], [0, 0, 1, 1], [], []>} : vector<8x8xf32>, vector<8x256xf32>, vector<8x256xf32> -> vector<8x256xf32>
    %c0_10 = arith.constant 0 : index
    %c0_11 = arith.constant 0 : index
    %11 = vector.load %arg6[%c0_10, %c0_11] : memref<8x1xf32, #tpu.memory_space<vmem>>, vector<8x1xf32>
    %12 = vector.broadcast %11 : vector<8x1xf32> to vector<8x256xf32>
    %13 = arith.addf %10, %12 : vector<8x256xf32>
    %c0_12 = arith.constant 0 : index
    %c0_13 = arith.constant 0 : index
    %14 = vector.load %arg7[%c0_12, %c0_13] : memref<8x4xf32, #tpu.memory_space<vmem>>, vector<8x4xf32>
    %cst_14 = arith.constant dense<0.000000e+00> : vector<8x256xf32>
    %15 = tpu.matmul %14, %1, %cst_14 {dimension_numbers = #tpu.dot_dimension_numbers<[1], [0], [0], [1], [0, 0, 1, 1], [], []>} : vector<8x4xf32>, vector<4x256xf32>, vector<8x256xf32> -> vector<8x256xf32>
    %16 = arith.addf %13, %15 : vector<8x256xf32>
    %cst_15 = arith.constant 0.000000e+00 : f32
    %17 = vector.broadcast %cst_15 : f32 to vector<8x256xf32>
    %18 = arith.maximumf %16, %17 : vector<8x256xf32>
    %c0_16 = arith.constant 0 : index
    %c0_17 = arith.constant 0 : index
    %c0_18 = arith.constant 0 : index
    %19 = vector.load %arg8[%c0_16, %c0_17, %c0_18] : memref<1x8x256xf32, #tpu.memory_space<vmem>>, vector<1x8x256xf32>
    %20 = vector.shape_cast %19 : vector<1x8x256xf32> to vector<8x256xf32>
    %21 = vector.shape_cast %18 : vector<8x256xf32> to vector<1x8x256xf32>
    tpu.vector_store %arg8[%c0_16, %c0_17, %c0_18], %21 {strides = array<i32>} : memref<1x8x256xf32, #tpu.memory_space<vmem>>, vector<1x8x256xf32>,
    return
  }
  func.func @transform_0(%arg0: i32, %arg1: i32) -> (i32, i32, i32) {
    %c0_i32 = arith.constant 0 : i32
    %c0_i32_0 = arith.constant 0 : i32
    return %arg0, %c0_i32, %arg1 : i32, i32, i32
  }
  func.func @transform_1(%arg0: i32, %arg1: i32) -> (i32, i32) {
    %c0_i32 = arith.constant 0 : i32
    %c0_i32_0 = arith.constant 0 : i32
    %c0_i32_1 = arith.constant 0 : i32
    return %c0_i32, %c0_i32_0 : i32, i32
  }
  func.func @transform_2(%arg0: i32, %arg1: i32) -> (i32, i32) {
    %c0_i32 = arith.constant 0 : i32
    %c0_i32_0 = arith.constant 0 : i32
    %c0_i32_1 = arith.constant 0 : i32
    return %c0_i32, %c0_i32_0 : i32, i32
  }
  func.func @transform_3(%arg0: i32, %arg1: i32) -> (i32, i32) {
    %c0_i32 = arith.constant 0 : i32
    %c0_i32_0 = arith.constant 0 : i32
    %c0_i32_1 = arith.constant 0 : i32
    return %c0_i32, %c0_i32_0 : i32, i32
  }
  func.func @transform_4(%arg0: i32, %arg1: i32) -> (i32, i32) {
    %c0_i32 = arith.constant 0 : i32
    %c0_i32_0 = arith.constant 0 : i32
    %c0_i32_1 = arith.constant 0 : i32
    return %c0_i32, %c0_i32_0 : i32, i32
  }
  func.func @transform_5(%arg0: i32, %arg1: i32) -> (i32, i32) {
    %c0_i32 = arith.constant 0 : i32
    %c0_i32_0 = arith.constant 0 : i32
    %c0_i32_1 = arith.constant 0 : i32
    return %c0_i32, %c0_i32_0 : i32, i32
  }
  func.func @transform_6(%arg0: i32, %arg1: i32) -> (i32, i32, i32) {
    %c0_i32 = arith.constant 0 : i32
    %c0_i32_0 = arith.constant 0 : i32
    return %arg0, %c0_i32, %arg1 : i32, i32, i32
  }
}

</mosaic_0001>

<bundles_post_ra>
// kernel: tpu_custom_call.1
= control target key start
LH: loop header
LB: loop body
LE: loop exit
PB: predicated region body
PF: predicated region fallthrough
CT: control target
= control target key end

     0   :  { %11 = vsyncpa [#allocation3], 0  ;;  %s965_s0 = inlined_call_operand.vmem [shape: f32[2,4,256], index: 0, kind: input, shape index: {}]   ;;  %s966_s1 = inlined_call_operand.vmem [shape: f32[8,4], index: 1, kind: input, shape index: {}]   ;;  %s967_s2 = inlined_call_operand.vmem [shape: f32[8,1], index: 2, kind: input, shape index: {}]   ;;  %s968_s3 = inlined_call_operand.vmem [shape: f32[8,8], index: 3, kind: input, shape index: {}]   ;;  %s969_s4 = inlined_call_operand.vmem [shape: f32[8,1], index: 4, kind: input, shape index: {}]   ;;  %s970_s5 = inlined_call_operand.vmem [shape: f32[8,4], index: 5, kind: input, shape index: {}]   ;;  %s971_s6 = inlined_call_operand.hbm [shape: f32[2,8,256], index: 6, kind: output, shape index: {}]  }
   0x1   :  { %13 = vsyncpa [#allocation3 + $0x1], 0  ;;  %s832_s21 = smov 0   ;;  %s834_s22 = smov 0  }
   0x2   :  { %s836_s23 = smov 0   ;;  %s838_s24 = smov 0  }
   0x3   :  { %s840_s25 = smov 0   ;;  %s842_s26 = smov 0  }
   0x4 LB: > { %s629_s27 = sadd.s32 4294967295, %s792_s26   ;;  %s630_s28 = sadd.s32 4294967294, %s792_s26   ;;  %s792_s26 = sphi %s842_s26, %s19_s26   ;;  %s788_s25 = sphi %s840_s25, %s978_s25   ;;  %s784_s24 = sphi %s838_s24, %s977_s24   ;;  %s780_s23 = sphi %s836_s23, %s976_s23   ;;  %s776_s22 = sphi %s834_s22, %s975_s22   ;;  %s772_s21 = sphi %s832_s21, %s974_s21  }
   0x5   : > { %s31_s29 = sadd.s32 1, %s788_s25  ;;  %s173_s30 = sadd.s32 1, %s780_s23 }
   0x6   : > { %p33_p0 = scmp.ge.s32.totalorder %s31_s29, 2  ;;  %p183_p1 = scmp.ne.s32.totalorder %s780_s23, %s776_s22 }
   0x7   : > { %p184_p2 = scmp.eq.s32.totalorder %s629_s27, 1  ;;  %p189_p3 = scmp.ne.s32.totalorder %s776_s22, %s772_s21 }
   0x8   : > { %s980_s29 = smov (%p33_p0, %s31_s29), 0  ;;  %p190_p5 = scmp.eq.s32.totalorder %s630_s28, 1 }
   0x9   : > { %p872_p4 = por %p184_p2, %p183_p1  ;;  %s168_s8 = ssub.s32 %s788_s25, %s980_s29 }
   0xa   : > { %p633_p6 = scmp.ge.s32.totalorder %s792_s26, 1  ;;  %p171_p7 = scmp.eq.s32.totalorder %s168_s8, 0 }
   0xb   : > { %p879_p8 = por %p190_p5, %p189_p3  ;;  %p236_p9 = scmp.lt.s32.totalorder %s792_s26, 3 }
   0xc   : > { %s885_s10 = scalar_select %p171_p7, %s780_s23, %s173_s30  }
   0xd   : > { %p237_p10 = pnand %p633_p6, %p236_p9 }
   0xe   : > { %p271_p11 = scmp.lt.s32.totalorder (!%p237_p10), %s784_s24, 1  ;;  %v794_v0 = vmov (!%p237_p10), 0.0   ;;  %v795_v1 = vmov (!%p237_p10), 0   ;;  %v283_v2 = vld [vmem:[%s967_s2] sm:$0xff] (!%p237_p10)  ;;  %vm295_vm0 = vcmask (!%p237_p10), 1043456   ;;  %vm291_vm1 = vcmask (!%p237_p10), 31744  }
   0xf   : > { %240 = sbr.rel (%p237_p10) target bundleno = 489 (0x1e9), region = 44  ;;  %364 = vmatprep.mubr.f32.mxu0 (!%p237_p10), %v794_v0  ;;  %712 = vset.pattern.permute.xlu0 (!%p237_p10), %v795_v1  ;;  %v374_v3 = vld [vmem:[%s969_s4] sm:$0xff] (!%p237_p10)  ;;  %vm380_vm2 = vcmask (!%p237_p10), 64512   ;;  %s267_s12 = sand.u32 (!%p237_p10), 1, %s776_s22  }
  0x10   : > { %286 = vperm.xlu0 (!%p237_p10), %712, %v283_v2   ;;  %448 = vmatprep.mubr.f32.mxu1 (!%p237_p10), %v794_v0  ;;  %v282_v6 = vld [vmem:[%s966_s1] sm:$0xff] (!%p237_p10)  ;;  %s650_s14 = sshll.u32 (!%p237_p10), %s784_s24, 8  ;;  %s537_s20 = scalar_lea.sflag (!%p237_p10), [#allocation3], %s267_s12 }
  0x11   : > { %v373_v14 = vld [vmem:[%s968_s3] sm:$0xff] (!%p237_p10) }
  0x12   : > { %v455_v15 = vld [vmem:[%s970_s5] sm:$0xff] (!%p237_p10) }
  0x14   : > { %377 = vperm.xlu0 (!%p237_p10), %712, %v374_v3  }
  0x16   : > { %s272_s13 = scalar_select %p271_p11, %s784_s24, 1 }
  0x17   : > { %s796_s24 = smov [#allocation2]  }
  0x18   : > { %s649_s16 = sshll.u32 %s272_s13, 3  ;;  %s634_s13 = sshll.u32 %s267_s12, 4 }
  0x19   : > { %s278_s19 = scalar_lea.vmem %s965_s0, %s649_s16  ;;  %s269_s15 = scalar_lea.vmem [#allocation2], %s634_s13 }
  0x1a   : > { %v281_v4 = vld [vmem:[%s278_s19] sm:$0xff]  ;;  %s553_s16 = sshll.u32 %s269_s15, 4  ;;  %s918_s19 = scalar_lea.hbm %s971_s6, %s650_s14  ;;  %s920_s16 = int_to_ptr.vmem [resolvable:$true] %s553_s16 }
  0x1b   : > { %v290_v5 = vcombine.high %v281_v4, %v281_v4  ;;  %s714_s27 = scalar_lea.vmem %s920_s16, 256  ;;  %s718_s28 = sshll.u32 %s796_s24, 4  ;;  %s719_s28 = int_to_ptr.vmem [resolvable:$false] %s718_s28 }
  0x1c   : > { %p715_p12 = scmp.ne.s32.totalorder %s920_s16, %s714_s27  ;;  %s720_s30 = scalar_lea.vmem %s719_s28, 512 }
  0x1d   : > { %637 = vmatprep.subr.msk.mxu0 %vm295_vm0, %v290_v5  ;;  %p721_p1 = scmp.lt.s32.totalorder %s920_s16, %s719_s28  ;;  %p722_p2 = scmp.lt.s32.totalorder %s720_s30, %s714_s27 }
  0x1e   : > { %638 = vmatpush1.msk.msra.mxu0 %vm295_vm0, %v281_v4  ;;  %p716_p13 = pnand %p715_p12, %p872_p4 }
  0x1f   : > { %639 = vmatmul.mubr.msk.f32.vlgmr.msra.gmra.mrb[0].mxu0 %vm291_vm1, %v282_v6  ;;  %p723_p3 = por %p722_p2, %p721_p1 }
  0x20   : > { %p717_p0 = pneg %p716_p13 }
  0x22   : > { %p724_p5 = pnand %p723_p3, %p717_p0 }
  0x8f   : > { %v287_v7 = vpop.permute.xlu0 %286 }
  0x93   : > { %v378_v16 = vpop.permute.xlu0 %377 }
  0xf2   : > { %v366_v8 = vpop.f32.mrb[0].mxu0 }
  0xf3   : > { %v367_v9 = vadd.f32 %v366_v8, %v287_v7  ;;  %v368_v10 = vpop.f32.mrb[1].mxu0 }
  0xf4   : > { %v369_v11 = vadd.f32 %v368_v10, %v287_v7 }
  0xf5   : > { %v371_v13 = vmax.f32 %v367_v9, 0.0 }
  0xf6   : > { %v372_v12 = vmax.f32 %v369_v11, 0.0 }
  0xf8   : > { %384 = vmatprep.subr.mxu1 %v372_v12 }
  0xf9   : > { %385 = vmatpush1.msra.mxu1 %v371_v13 }
  0xfa   : > { %640 = vmatmul.mubr.msk.f32.vlgmr.msra.gmra.mrb[0].mxu1 %vm380_vm2, %v373_v14  ;;  %641 = vmatprep.subr.msk.mxu1 %vm295_vm0, %v290_v5 }
  0xfb   : > { %642 = vmatpush1.msk.msra.mxu1 %vm295_vm0, %v281_v4  ;;  %523 = vmatprep.mubr.f32.mxu1 %v794_v0 }
 0x102   : > { %643 = vmatmul.mubr.msk.f32.vlgmr.msra.gmra.mrb[0].mxu1 %vm291_vm1, %v455_v15 }
 0x1d5   : > { %v525_v17 = vpop.f32.mrb[0].mxu1 }
 0x1d6   : > { %v651_v18 = vadd.f32 %v525_v17, %v378_v16  ;;  %v527_v19 = vpop.f32.mrb[1].mxu1 }
 0x1d7   : > { %v652_v20 = vadd.f32 %v527_v19, %v378_v16 }
 0x1d8   : > { %v532_v21 = vmax.f32 %v651_v18, 0.0 }
 0x1d9   : > { %v533_v22 = vmax.f32 %v652_v20, 0.0 }
 0x1da   : > { %534 = vst [vmem:[%s269_s15] sm:$0xff] %v532_v21 }
 0x1db   : > { %535 = vst [vmem:[%s269_s15 + $0x8] sm:$0xff] %v533_v22 }
 0x1dc   : > { %727 = shalt.err (!%p724_p5)
}
 0x1dd   : > { %s728_s8 = scalar_lea.hbm %s918_s19, 256  ;;  %s732_s13 = scalar_lea.hbm %s971_s6, 512 }
 0x1de   : > { %p729_p6 = scmp.ne.s32.totalorder %s918_s19, %s728_s8  ;;  %p733_p10 = scmp.lt.u32.totalorder %s918_s19, %s971_s6 }
 0x1df   : > { %p734_p11 = scmp.lt.u32.totalorder %s732_s13, %s728_s8  ;;  %p736_p13 = scmp.lt.u32.totalorder %s728_s8, %s918_s19 }
 0x1e0   : > { %p730_p7 = pnand %p729_p6, %p872_p4 }
 0x1e1   : > { %p735_p12 = por %p734_p11, %p733_p10 }
 0x1e2   : > { %p731_p9 = pneg %p730_p7 }
 0x1e3   : > { %p737_p0 = por %p736_p13, %p735_p12 }
 0x1e5   : > { %p738_p1 = pnand %p737_p0, %p731_p9 }
 0x1e7   : > { %741 = shalt.err (!%p738_p1)
}
 0x1e8   : > { %655 = dma.vmem_to_hbm [thread:$0]  (%p872_p4), %s920_s16, 256, %s918_s19, %s537_s20  }
 0x1e9 PF: > { %p661_p2 = scmp.ge.s32.totalorder %s792_s26, 2  ;;  %s565_s17 = sand.u32 1, %s772_s21  }
 0x1ea   : > { %s566_s18 = scalar_lea.sflag [#allocation3], %s565_s17 }
 0x1eb   : > { %p658_p3 = pnand %p661_p2, %p879_p8 }
 0x1ed   : > { %767 = dma.done.wait (!%p658_p3), %s566_s18, 256  }
 0x1ee   : > { %769 = vsyncadd (!%p658_p3), %s566_s18, 4294967040  ;;  %s19_s26 = sadd.s32 1, %s792_s26   ;;  %s974_s21 = smov %s776_s22 }
 0x1ef   : > { %p16_p5 = scmp.ge.s32.totalorder %s19_s26, 4   ;;  %s975_s22 = smov %s780_s23 }
 0x1f0   : > { %s976_s23 = smov %s885_s10  ;;  %s977_s24 = smov %s788_s25 }
 0x1f1   : > { %s978_s25 = smov %s980_s29  ;;  %18 = sbr.rel (!%p16_p5) target bundleno = 4 (0x4), region = 79 }
 0x1f8   :  { %571 = vsyncpa [#allocation3], 1 }
 0x1f9   :  { %573 = vsyncpa [#allocation3 + $0x1], 1 }

</bundles_post_ra>
